<compile_context>
chip_gen: v7x
topology: tpu7x:2x2x1
jax: 0.10.0
libtpu: 0.0.40
codegen_flags: <defaults>
</compile_context>

<pallas_src>
import functools

import numpy as np
import jax
import jax.numpy as jnp
from jax import lax
from jax.experimental import pallas as pl
from jax.experimental.pallas import tpu as pltpu


# ----------------------------------------------------------------------------
# pltpu.roll direction probe (runs once, eagerly, on the real hardware)
# ----------------------------------------------------------------------------
def _detect_roll_sign():
    """Return m such that pltpu.roll(x, (m*s) % N, axis=-1)[..., l] == x[..., (l+s) % N]."""

    def kernel(x_ref, o_ref):
        o_ref[...] = pltpu.roll(x_ref[...], 1, 1)

    x = lax.broadcasted_iota(jnp.float32, (8, 256), 1)
    r = pl.pallas_call(
        kernel, out_shape=jax.ShapeDtypeStruct((8, 256), jnp.float32))(x)
    r00 = float(r[0, 0])
    if r00 == 255.0:      # numpy-roll semantics: out[l] = x[(l - shift) % N]
        return -1
    if r00 == 1.0:        # reversed semantics:   out[l] = x[(l + shift) % N]
        return 1
    raise RuntimeError(f"unexpected pltpu.roll semantics (probe value {r00})")


# ----------------------------------------------------------------------------
# In-kernel building blocks (channel-first layout: (C, H*W), spatial on lanes)
# ----------------------------------------------------------------------------
_TAPS = tuple((ky - 1, kx - 1) for ky in range(3) for kx in range(3))


def _lane_shift(x, s, n, roll_sign):
    """Circular lane shift: out[..., l] = x[..., (l + s) % n]."""
    k = (roll_sign * s) % n
    if k == 0:
        return x
    return pltpu.roll(x, k, 1)


def _make_masks(H, W):
    """Zero-padding masks, one (1, H*W) bool per non-center tap (hoisted/reused)."""
    HW = H * W
    lane = lax.broadcasted_iota(jnp.int32, (1, HW), 1)
    ii = lane // W
    jj = lane % W
    masks = {}
    for dy, dx in _TAPS:
        conds = []
        if dy < 0:
            conds.append(ii >= 1)
        if dy > 0:
            conds.append(ii < H - 1)
        if dx < 0:
            conds.append(jj >= 1)
        if dx > 0:
            conds.append(jj < W - 1)
        if conds:
            masks[(dy, dx)] = functools.reduce(jnp.logical_and, conds)
    return masks


def _conv3x3(x, wmat_ref, bias_ref, H, W, relu, roll_sign, masks, xcol_ref):
    """3x3 same-padding conv as ONE deep-K MXU matmul.

    x:        (Cin, H*W) f32 activations (Cin in {16,32,64}, spatial on lanes)
    wmat_ref: (Cout, 9*Cin) bf16, column order (ky, kx, ci)
    bias_ref: (Cout, 1) f32
    xcol_ref: (576, 1024) bf16 shared scratch (im2col columns built in place)
    returns   (Cout, H*W) f32
    """
    Cin, HW = x.shape
    for t, (dy, dx) in enumerate(_TAPS):
        tap = _lane_shift(x, dy * W + dx, HW, roll_sign)   # XLU rotate (free slot)
        m = masks.get((dy, dx))
        if m is not None:
            tap = jnp.where(m, tap, 0.0)                   # f32 masking (v5e-safe)
        # 16-sublane-aligned bf16 store into the persistent scratch.
        xcol_ref[t * Cin:(t + 1) * Cin, 0:HW] = tap.astype(jnp.bfloat16)
    xcol = xcol_ref[0:9 * Cin, 0:HW]                       # (9*Cin, H*W) bf16
    y = jnp.dot(wmat_ref[...], xcol, preferred_element_type=jnp.float32)
    y = y + bias_ref[...]
    if relu:
        y = jnp.maximum(y, 0.0)
    return y


def _pool_max(x, H, W, roll_sign):
    """Elementwise part of 2x2/stride-2 max pool: 3 rolls + max (f32)."""
    HW = H * W
    m = x
    for s in (1, W, W + 1):
        m = jnp.maximum(m, _lane_shift(x, s, HW, roll_sign))
    return m


def _maxpool2(x, sel_ref, H, W, roll_sign):
    """Max pool: rolls+max then one 0/1 lane-selection matmul (C, H*W) -> (C, H*W//4)."""
    m = _pool_max(x, H, W, roll_sign)
    # NOTE: if a bundle dump shows the MXU as the binding slot, this selection
    # matmul (and up3) can be replaced by strided lane compaction on scratch.
    return jnp.dot(m.astype(jnp.bfloat16), sel_ref[...],
                   preferred_element_type=jnp.float32)


# ----------------------------------------------------------------------------
# The single fused kernel: encoder convs -> FCs -> decoder convs, all in VMEM
# ----------------------------------------------------------------------------
def _autoencoder_kernel(roll_sign, x_ref,
                        we11, be11, we12, be12, we21, be21, we22, be22,
                        we31, be31, we32, be32,
                        wfe, bfe, wfd, bfd,
                        wd31, bd31, wd32, bd32, wd21, bd21, wd22, bd22,
                        wd11, bd11, wd12, bd12,
                        sel1, sel2, sel3t, ttup1, up2, up3,
                        o_ref, xcol_ref):
    # Hoisted boundary masks, reused by encoder and decoder convs of each size.
    m32 = _make_masks(32, 32)
    m16 = _make_masks(16, 16)
    m8 = _make_masks(8, 8)

    def conv(x, w, b, H, W, relu, masks):
        return _conv3x3(x, w, b, H, W, relu, roll_sign, masks, xcol_ref)

    # ---- encoder ----------------------------------------------------------
    x = x_ref[0]                                         # (16, 1024), ch 3..15 zero
    x = conv(x, we11, be11, 32, 32, True, m32)           # (16, 1024)
    x = conv(x, we12, be12, 32, 32, True, m32)           # (16, 1024)
    x = _maxpool2(x, sel1, 32, 32, roll_sign)            # (16, 256)
    x = conv(x, we21, be21, 16, 16, True, m16)           # (32, 256)
    x = conv(x, we22, be22, 16, 16, True, m16)           # (32, 256)
    x = _maxpool2(x, sel2, 16, 16, roll_sign)            # (32, 64)
    x = conv(x, we31, be31, 8, 8, True, m8)              # (64, 64)
    x = conv(x, we32, be32, 8, 8, True, m8)              # (64, 64)
    maxed = _pool_max(x, 8, 8, roll_sign)                # (64, 64), selection folded below

    # ---- bottleneck: pool3 + flatten + fc_enc + fc_dec + unflatten + up1 ---
    # All data movement between (64 ch, 16 sp) and the flat 1024 vector is
    # expressed with matmuls + an iota blockmask (no in-kernel reshape).
    cc = lax.broadcasted_iota(jnp.int32, (64, 1024), 0)
    ll = lax.broadcasted_iota(jnp.int32, (64, 1024), 1)
    bm = (ll // 16) == cc                                # blockmask [l//16 == c]

    mmat = jnp.dot(maxed.astype(jnp.bfloat16), sel3t[...],
                   preferred_element_type=jnp.float32)   # (64,1024): pooled[c, l%16]
    mmat = jnp.where(bm, mmat, 0.0)                      # == flattened layout per row
    h = jnp.dot(mmat.astype(jnp.bfloat16), wfe[...],
                preferred_element_type=jnp.float32)      # (64, hidden) per-channel partials
    h = jnp.sum(h, axis=0, keepdims=True) + bfe[...]     # (1, hidden)  == encoder.fcn

    dec = jnp.dot(h.astype(jnp.bfloat16), wfd[...],
                  preferred_element_type=jnp.float32) + bfd[...]   # (1,1024) == decoder.fcn
    dec = jnp.where(bm, dec, 0.0)                        # broadcast + block-mask: un-flatten
    x = jnp.dot(dec.astype(jnp.bfloat16), ttup1[...],
                preferred_element_type=jnp.float32)      # (64, 64): view(64,4,4)+up1 fused

    # ---- decoder ----------------------------------------------------------
    x = conv(x, wd31, bd31, 8, 8, False, m8)             # (64, 64)
    x = conv(x, wd32, bd32, 8, 8, False, m8)             # (32, 64)
    x = jnp.dot(x.astype(jnp.bfloat16), up2[...],
                preferred_element_type=jnp.float32)      # (32, 256)  bilinear 2x
    x = conv(x, wd21, bd21, 16, 16, False, m16)          # (32, 256)
    x = conv(x, wd22, bd22, 16, 16, False, m16)          # (16, 256)
    x = jnp.dot(x.astype(jnp.bfloat16), up3[...],
                preferred_element_type=jnp.float32)      # (16, 1024) bilinear 2x
    x = conv(x, wd11, bd11, 32, 32, False, m32)          # (16, 1024)
    x = conv(x, wd12, bd12, 32, 32, False, m32)          # (3, 1024)
    o_ref[0] = x


# ----------------------------------------------------------------------------
# pallas_call wrapper
# ----------------------------------------------------------------------------
def _const_spec(a):
    # Constant block index => fetched into VMEM once, reused for every grid step.
    return pl.BlockSpec(a.shape, lambda i, _n=a.ndim: (0,) * _n)


def autoencoder_forward(params, imgs, *, roll_sign):
    """imgs: (B, 3, 32, 32) NCHW float32 -> (B, 3, 32, 32), matching the torch module."""
    B, C, H, W = imgs.shape
    assert (C, H, W) == (3, 32, 32)
    x = imgs.astype(jnp.float32).reshape(B, 3, H * W)     # NCHW == (C, H*W)
    # Pad channels 3 -> 16 (zero channels / zero weight columns) so that every
    # im2col tap store hits a 16-sublane-aligned slot of the bf16 scratch.
    x = jnp.concatenate([x, jnp.zeros((B, 13, H * W), jnp.float32)], axis=1)

    p = params
    consts = [*p["e11"], *p["e12"], *p["e21"], *p["e22"], *p["e31"], *p["e32"],
              *p["efc"], *p["dfc"],
              *p["d31"], *p["d32"], *p["d21"], *p["d22"], *p["d11"], *p["d12"],
              p["pool1"], p["pool2"], p["sel3t"], p["ttup1"], p["up2"], p["up3"]]

    out = pl.pallas_call(
        functools.partial(_autoencoder_kernel, roll_sign),
        out_shape=jax.ShapeDtypeStruct((B, 3, H * W), jnp.float32),
        grid=(B,),
        in_specs=[pl.BlockSpec((1, 16, H * W), lambda i: (i, 0, 0))]
                 + [_const_spec(c) for c in consts],
        out_specs=pl.BlockSpec((1, 3, H * W), lambda i: (i, 0, 0)),
        scratch_shapes=[pltpu.VMEM((9 * 64, H * W), jnp.bfloat16)],
        compiler_params=pltpu.CompilerParams(
            dimension_semantics=("parallel",),
            vmem_limit_bytes=32 * 1024 * 1024),
    )(x, *consts)
    return out.reshape(B, 3, H, W)


# ----------------------------------------------------------------------------
# Parameters: synthetic torch-layout init + conversion to kernel layout
# ----------------------------------------------------------------------------
def init_torch_params(key, hidden):
    """Synthetic params in PyTorch layout: conv (Cout,Cin,3,3), linear (out,in)."""
    keys = iter(jax.random.split(key, 64))

    def conv(cin, cout, gain):
        w = gain * jax.random.normal(next(keys), (cout, cin, 3, 3), jnp.float32) / np.sqrt(9 * cin)
        b = 0.01 * jax.random.normal(next(keys), (cout,), jnp.float32)
        return w, b

    def lin(din, dout):
        w = jax.random.normal(next(keys), (dout, din), jnp.float32) / np.sqrt(din)
        b = 0.01 * jax.random.normal(next(keys), (dout,), jnp.float32)
        return w, b

    g = float(np.sqrt(2.0))
    return {
        "e11": conv(3, 16, g),  "e12": conv(16, 16, g),
        "e21": conv(16, 32, g), "e22": conv(32, 32, g),
        "e31": conv(32, 64, g), "e32": conv(64, 64, g),
        "efc": lin(1024, hidden), "dfc": lin(hidden, 1024),
        "d31": conv(64, 64, 1.0), "d32": conv(64, 32, 1.0),
        "d21": conv(32, 32, 1.0), "d22": conv(32, 16, 1.0),
        "d11": conv(16, 16, 1.0), "d12": conv(16, 3, 1.0),
    }


def _bilerp_matrix(n_in, n_out):
    """1-D bilinear weights, align_corners=True (nn.UpsamplingBilinear2d)."""
    Wm = np.zeros((n_out, n_in), np.float32)
    if n_in == 1 or n_out == 1:
        Wm[:, 0] = 1.0
        return Wm
    scale = (n_in - 1) / (n_out - 1)
    for o in range(n_out):
        src = o * scale
        i0 = min(int(np.floor(src)), n_in - 1)
        i1 = min(i0 + 1, n_in - 1)
        t = src - i0
        Wm[o, i0] += 1.0 - t
        Wm[o, i1] += t
    return Wm


def _upsample_kron(h, w):
    """(h*w, 4*h*w) operator: out[:, io*2w+jo] = sum_ij x[:, i*w+j]*Ah[io,i]*Aw[jo,j]."""
    Ah = _bilerp_matrix(h, 2 * h)
    Aw = _bilerp_matrix(w, 2 * w)
    return np.kron(Ah.T, Aw.T)


def _pool_select(h, w):
    """(h*w, h*w//4) 0/1 matrix selecting the top-left lane of each 2x2 block."""
    ho, wo = h // 2, w // 2
    S = np.zeros((h * w, ho * wo), np.float32)
    for io in range(ho):
        for jo in range(wo):
            S[(2 * io) * w + 2 * jo, io * wo + jo] = 1.0
    return S


def prepare_params(tp):
    """torch layout -> kernel layout.

    conv (Cout,Cin,3,3) -> (Cout, 9*Cin) bf16, columns ordered (ky, kx, ci);
    linear (out,in)     -> (in, out) bf16; biases -> f32 column / row vectors.
    Also bundles the bf16 structural operators: 2x2-pool selection matrices,
    lane-tiled pool3 selection (folds torch .view(B,-1)), fused
    unflatten+first-upsample operator, and the bilinear-kron upsamples.
    """
    def conv(name, cin_pad=None):
        w, b = tp[name]
        cout, cin = w.shape[0], w.shape[1]
        if cin_pad is not None and cin_pad > cin:
            w = jnp.pad(w, ((0, 0), (0, cin_pad - cin), (0, 0), (0, 0)))
        wm = jnp.transpose(w, (0, 2, 3, 1)).reshape(cout, -1).astype(jnp.bfloat16)
        return wm, b.reshape(cout, 1).astype(jnp.float32)

    def lin(name):
        w, b = tp[name]
        return w.T.astype(jnp.bfloat16), b.reshape(1, -1).astype(jnp.float32)

    sel3 = _pool_select(8, 8)          # (64, 16)
    up1k = _upsample_kron(4, 4)        # (16, 64)
    return {
        "e11": conv("e11", cin_pad=16), "e12": conv("e12"),
        "e21": conv("e21"), "e22": conv("e22"),
        "e31": conv("e31"), "e32": conv("e32"),
        "efc": lin("efc"), "dfc": lin("dfc"),
        "d31": conv("d31"), "d32": conv("d32"),
        "d21": conv("d21"), "d22": conv("d22"),
        "d11": conv("d11"), "d12": conv("d12"),
        "pool1": jnp.asarray(_pool_select(32, 32), jnp.bfloat16),
        "pool2": jnp.asarray(_pool_select(16, 16), jnp.bfloat16),
        # pool3 selection pre-tiled along lanes: mmat[c, l] = pooled[c, l % 16]
        "sel3t": jnp.asarray(np.tile(sel3, (1, 64)), jnp.bfloat16),
        # torch .view(B,64,4,4) + first bilinear 2x upsample fused: row l = up1k[l % 16]
        "ttup1": jnp.asarray(np.tile(up1k, (64, 1)), jnp.bfloat16),
        "up2": jnp.asarray(_upsample_kron(8, 8), jnp.bfloat16),
        "up3": jnp.asarray(_upsample_kron(16, 16), jnp.bfloat16),
    }


# ----------------------------------------------------------------------------
# Pure-JAX f32 reference of the PyTorch module (for numerics validation)
# ----------------------------------------------------------------------------
def reference_forward(tp, imgs):
    def conv(x, name):
        w, b = tp[name]
        y = lax.conv_general_dilated(x, w, (1, 1), ((1, 1), (1, 1)),
                                     dimension_numbers=("NCHW", "OIHW", "NCHW"))
        return y + b.reshape(1, -1, 1, 1)

    def pool(x):
        return lax.reduce_window(x, -jnp.inf, lax.max,
                                 (1, 1, 2, 2), (1, 1, 2, 2), "VALID")

    def up(x):
        B, C, H, W = x.shape
        Ah = jnp.asarray(_bilerp_matrix(H, 2 * H))
        Aw = jnp.asarray(_bilerp_matrix(W, 2 * W))
        y = jnp.einsum("oi,bcij->bcoj", Ah, x)
        return jnp.einsum("pj,bcoj->bcop", Aw, y)

    x = imgs.astype(jnp.float32)
    x = jax.nn.relu(conv(x, "e11")); x = jax.nn.relu(conv(x, "e12")); x = pool(x)
    x = jax.nn.relu(conv(x, "e21")); x = jax.nn.relu(conv(x, "e22")); x = pool(x)
    x = jax.nn.relu(conv(x, "e31")); x = jax.nn.relu(conv(x, "e32")); x = pool(x)
    B = x.shape[0]
    x = x.reshape(B, -1)
    we, be = tp["efc"]; x = x @ we.T + be
    wd, bd = tp["dfc"]; x = x @ wd.T + bd
    x = x.reshape(B, 64, 4, 4)
    x = up(x); x = conv(x, "d31"); x = conv(x, "d32")
    x = up(x); x = conv(x, "d21"); x = conv(x, "d22")
    x = up(x); x = conv(x, "d11"); x = conv(x, "d12")
    return x


# ----------------------------------------------------------------------------
if __name__ == "__main__":
    roll_sign = _detect_roll_sign()

    key = jax.random.PRNGKey(0)
    pkey, xkey = jax.random.split(key)
    hidden_size = 32
    torch_params = init_torch_params(pkey, hidden_size)
    params = prepare_params(torch_params)
    # 32x32 input so that 3 pools -> 4x4x64 = 1024 = fcn in_features.
    imgs = jax.random.normal(xkey, (2, 3, 32, 32), jnp.float32)

    fwd = jax.jit(functools.partial(autoencoder_forward, roll_sign=roll_sign))
    out = jax.block_until_ready(fwd(params, imgs))
    assert out.shape == (2, 3, 32, 32) and out.dtype == jnp.float32

    # Validate against a pure-JAX f32 replica of the PyTorch module
    # (kernel uses bf16 matmul operands -> loose tolerance).
    ref = jax.block_until_ready(jax.jit(reference_forward)(torch_params, imgs))
    err = float(jnp.max(jnp.abs(out - ref)))
    scale = float(jnp.max(jnp.abs(ref))) + 1e-3
    assert err <= 0.1 * scale + 0.05, f"numerics mismatch: max|diff|={err}, max|ref|={scale}"

    print("KERNEL_OK")
</pallas_src>

<mosaic_0001>
module attributes {stable_mosaic.version = 11 : i64} {
  func.func @kernel(%arg0: memref<8x256xf32, #tpu.memory_space<vmem>>, %arg1: memref<8x256xf32, #tpu.memory_space<vmem>>) attributes {dimension_semantics = [], scalar_prefetch = 0 : i64, scratch_operands = 0 : i64, tpu.core_type = #tpu.core_type<tc>} {
    %c0 = arith.constant 0 : index
    %c0_0 = arith.constant 0 : index
    %0 = vector.load %arg0[%c0, %c0_0] : memref<8x256xf32, #tpu.memory_space<vmem>>, vector<8x256xf32>
    %c1_i32 = arith.constant 1 : i32
    %1 = tpu.dynamic_rotate %0 by %c1_i32 dim 1 : vector<8x256xf32>, i32 -> vector<8x256xf32>
    %c0_1 = arith.constant 0 : index
    %c0_2 = arith.constant 0 : index
    %2 = vector.load %arg1[%c0_1, %c0_2] : memref<8x256xf32, #tpu.memory_space<vmem>>, vector<8x256xf32>
    tpu.vector_store %arg1[%c0_1, %c0_2], %1 {strides = array<i32>} : memref<8x256xf32, #tpu.memory_space<vmem>>, vector<8x256xf32>,
    return
  }
}

</mosaic_0001>

<bundles_post_ra>
// kernel: tpu_custom_call.1
= control target key start
LH: loop header
LB: loop body
LE: loop exit
PB: predicated region body
PF: predicated region fallthrough
CT: control target
= control target key end

     0   :  { %6 = vsyncpa [#allocation3], 0  ;;  %s137_s0 = inlined_call_operand.hbm [shape: f32[8,256], index: 0, kind: input, shape index: {}]   ;;  %s138_s1 = inlined_call_operand.hbm [shape: f32[8,256], index: 1, kind: output, shape index: {}]  }
   0x1   :  { %7 = vsyncpa [#allocation4], 0  ;;  %s100_s6 = smov [#allocation2]   ;;  %s52_s10 = scalar_lea.hbm %s137_s0, 256 }
   0x2   :  { %s14_s7 = sshll.u32 %s100_s6, 4  ;;  %p53_p0 = scmp.ne.s32.totalorder %s137_s0, %s52_s10  ;;  %s15_s7 = int_to_ptr.vmem [resolvable:$true] %s14_s7 }
   0x3   :  { %p56_p1 = scmp.lt.u32.totalorder %s52_s10, %s137_s0 }
   0x5   :  { %p58_p2 = pnand %p56_p1, %p53_p0 }
   0x7   :  { %61 = shalt.err (!%p58_p2)
}
   0x8   :  { %s62_s15 = scalar_lea.vmem %s15_s7, 256  ;;  %p67_p4 = scmp.lt.s32.totalorder %s15_s7, %s15_s7 }
   0x9   :  { %p63_p3 = scmp.ne.s32.totalorder %s15_s7, %s62_s15  ;;  %p68_p5 = scmp.lt.s32.totalorder %s62_s15, %s62_s15 }
   0xb   :  { %p69_p6 = por %p68_p5, %p67_p4 }
   0xd   :  { %p70_p7 = pnand %p69_p6, %p63_p3 }
   0xf   :  { %73 = shalt.err (!%p70_p7)
}
  0x10   :  { %17 = dma.hbm_to_vmem [thread:$0]  %s137_s0, 256, %s15_s7, [#allocation3]  }
  0x11   :  { %96 = dma.done.wait [#allocation3], 256  }
  0x12   :  { %97 = vsyncadd [#allocation3], 4294967040  ;;  %v21_v0 = vld [vmem:[#allocation2] sm:$0xff]  ;;  %s101_s18 = smov 1   ;;  %v22_v1 = vld [vmem:[#allocation2 + $0x8] sm:$0xff]  ;;  %v27_v2 = vlaneseq  ;;  %s102_s19 = smov [#allocation5]  }
  0x13   :  { %23 = vrot.lane.b32.xlu0 %v21_v0, %s101_s18  ;;  %s40_s20 = sshll.u32 %s102_s19, 4  ;;  %s41_s20 = int_to_ptr.vmem [resolvable:$true] %s40_s20 }
  0x14   :  { %v28_v3 = vand.u32 127, %v27_v2  ;;  %s74_s0 = scalar_lea.vmem %s41_s20, 256  ;;  %p79_p9 = scmp.lt.s32.totalorder %s41_s20, %s41_s20 }
  0x15   :  { %p75_p8 = scmp.ne.s32.totalorder %s41_s20, %s74_s0  ;;  %p80_p10 = scmp.lt.s32.totalorder %s74_s0, %s74_s0 }
  0x16   :  { %vm29_vm0 = vcmp.lt.s32.totalorder %v28_v3, 1 }
  0x17   :  { %25 = vrot.lane.b32.xlu0 %v22_v1, %s101_s18  ;;  %p81_p11 = por %p80_p10, %p79_p9 }
  0x19   :  { %p82_p12 = pnand %p81_p11, %p75_p8 }
  0x85   :  { %v24_v4 = vpop.permute.xlu0 %23 }
  0x89   :  { %v26_v5 = vpop.permute.xlu0 %25 }
  0x8a   :  { %v30_v6 = vsel %vm29_vm0, %v24_v4, %v26_v5  ;;  %v31_v7 = vsel %vm29_vm0, %v26_v5, %v24_v4 }
  0x8b   :  { %32 = vst [vmem:[#allocation5] sm:$0xff] %v31_v7  ;;  %33 = vst [vmem:[#allocation5 + $0x8] sm:$0xff] %v30_v6 }
  0x8c   :  { %85 = shalt.err (!%p82_p12)
}
  0x8d   :  { %s86_s23 = scalar_lea.hbm %s138_s1, 256 }
  0x8e   :  { %p87_p13 = scmp.ne.s32.totalorder %s138_s1, %s86_s23  ;;  %p90_p0 = scmp.lt.u32.totalorder %s86_s23, %s138_s1 }
  0x90   :  { %p92_p1 = pnand %p90_p0, %p87_p13 }
  0x92   :  { %95 = shalt.err (!%p92_p1)
}
  0x93   :  { %43 = dma.vmem_to_hbm [thread:$0]  %s41_s20, 256, %s138_s1, [#allocation4]  }
  0x94   :  { %98 = dma.done.wait [#allocation4], 256  }
  0x95   :  { %99 = vsyncadd [#allocation4], 4294967040 }
  0x96   :  { %47 = vsyncpa [#allocation3], 1 }
  0x97   :  { %48 = vsyncpa [#allocation4], 1 }

</bundles_post_ra>
